<compile_context>
chip_gen: v7x
topology: tpu7x:2x2x1
jax: 0.10.0
libtpu: 0.0.40
codegen_flags: <defaults>
</compile_context>

<pallas_src>
import functools
import math

import jax
import jax.numpy as jnp
from jax.experimental import pallas as pl
from jax.experimental.pallas import tpu as pltpu


# -----------------------------------------------------------------------------
# PE table (an __init__-time buffer in the PyTorch module) — plain JAX.
# -----------------------------------------------------------------------------
def _make_pe_table(max_len: int, d_model: int) -> jnp.ndarray:
    position = jnp.arange(0, max_len, dtype=jnp.float32)[:, None]            # [L, 1]
    div_term = jnp.exp(
        jnp.arange(0, d_model, 2, dtype=jnp.float32) * (-math.log(10000.0) / d_model)
    )                                                                         # [ceil(D/2)]
    args = position * div_term                                                # [L, ceil(D/2)]
    pe = jnp.zeros((max_len, d_model), dtype=jnp.float32)
    pe = pe.at[:, 0::2].set(jnp.sin(args))
    pe = pe.at[:, 1::2].set(jnp.cos(args)[:, : d_model // 2])  # guard odd d_model
    return pe


# -----------------------------------------------------------------------------
# Tiling helpers.
# -----------------------------------------------------------------------------
def _round_up(x: int, m: int) -> int:
    return ((x + m - 1) // m) * m


def _vmem_capacity_bytes() -> int:
    try:
        return int(pltpu.get_tpu_info().vmem_capacity_bytes)
    except Exception:
        return 64 * 1024 * 1024  # conservative (v7x-sized) fallback


def _choose_seq_tile(S: int, pipelined_bytes_per_row: int, budget_bytes: int) -> int:
    """Largest multiple-of-8 row tile whose double-buffered working set fits."""
    tile = max(8, (budget_bytes // max(1, pipelined_bytes_per_row)) // 8 * 8)
    if S > 16:
        # keep >= 2 grid steps so v7x can shard the grid across its 2 TensorCores
        tile = min(tile, _round_up(pl.cdiv(S, 2), 8))
    tile = min(tile, _round_up(S, 8))
    return int(max(8, tile))


# -----------------------------------------------------------------------------
# 1) Standalone PositionEncoding.forward  (x: [S, B, D])
# -----------------------------------------------------------------------------
def _pe_add_kernel(x_ref, pe_ref, o_ref, *, batch: int, d_model: int):
    # x_ref/o_ref: (seq_tile, batch*d_model)   pe_ref: (seq_tile, d_model)
    pe = pe_ref[...]
    for b in range(batch):  # static python loop; batch is tiny (1-2) here
        sl = slice(b * d_model, (b + 1) * d_model)
        o_ref[:, sl] = x_ref[:, sl] + pe


def position_encoding(x, pe_table, *, seq_tile=None):
    """x: [S, B, D];  pe_table: [max_len, D]  ->  x + pe[:S] (broadcast over batch).

    Dropout(p=0.1) in eval mode is identity.
    """
    S, B, D = x.shape
    assert pe_table.shape[1] == D and pe_table.shape[0] >= S
    pe = pe_table if pe_table.dtype == x.dtype else pe_table.astype(x.dtype)

    lane_width = B * D                      # lane-dense last dim of the 2D slab
    x2 = x.reshape(S, lane_width)           # free: row-major contiguous reshape

    ebytes = jnp.dtype(x.dtype).itemsize
    cap = _vmem_capacity_bytes()
    if seq_tile is None:
        # 2 pipeline buffers for each of: x tile, out tile, pe tile
        per_row = 2 * (2 * lane_width + D) * ebytes
        seq_tile = _choose_seq_tile(S, per_row, cap // 2)
    grid_rows = pl.cdiv(S, seq_tile)
    # ragged last block may read PE rows past S; they must exist in the table
    assert pe.shape[0] >= grid_rows * seq_tile, "pe_table too short for padded grid"

    out = pl.pallas_call(
        functools.partial(_pe_add_kernel, batch=B, d_model=D),
        out_shape=jax.ShapeDtypeStruct((S, lane_width), x.dtype),
        grid_spec=pltpu.PrefetchScalarGridSpec(
            num_scalar_prefetch=0,
            grid=(grid_rows,),
            in_specs=[
                pl.BlockSpec((seq_tile, lane_width), lambda i: (i, 0)),
                pl.BlockSpec((seq_tile, D), lambda i: (i, 0)),
            ],
            out_specs=pl.BlockSpec((seq_tile, lane_width), lambda i: (i, 0)),
        ),
        compiler_params=pltpu.CompilerParams(
            dimension_semantics=("parallel",),
            vmem_limit_bytes=int(cap * 3 // 4),
        ),
    )(x2, pe)
    return out.reshape(S, B, D)


# -----------------------------------------------------------------------------
# 2) Fused Decoder front-end: position2embedding (Linear d_feature->d_model)
#    + transpose + PositionEncoding add, in one pass (no HBM round-trip).
# -----------------------------------------------------------------------------
def _pos2emb_pe_kernel(pos_ref, wt_ref, bias_ref, pe_ref, o_ref, *, batch: int, d_feature: int):
    # pos_ref: (B, seq_tile, F)  wt_ref: (F, D)  bias_ref: (1, D)
    # pe_ref:  (seq_tile, D)     o_ref:  (B, seq_tile, D)
    base = pe_ref[...] + bias_ref[...]                      # (seq_tile, D)
    wt = wt_ref[...]                                        # (F, D)
    for b in range(batch):                                  # static, tiny
        x = pos_ref[b]                                      # (seq_tile, F)
        acc = base
        for f in range(d_feature):                          # F == 3: VPU broadcast-MACs
            acc = acc + x[:, f:f + 1] * wt[f:f + 1, :]      # (no tiny-K MXU matmul)
        o_ref[b] = acc.astype(o_ref.dtype)


def pos2emb_position_encoding(position_seq, weight, bias, pe_table, *, seq_tile=None):
    """out[b, s, :] = position_seq[b, s, :] @ W.T + bias + pe[s, :]

    Equivalent to pos_enc(pos2emb(position_seq).transpose(0, 1)).transpose(0, 1)
    with eval-mode dropout, but the embedding never round-trips HBM.
    """
    B, S, F = position_seq.shape
    D, Fw = weight.shape
    assert Fw == F and bias.shape == (D,)
    assert pe_table.shape[1] == D and pe_table.shape[0] >= S

    dtype = position_seq.dtype
    wt = weight.T.astype(dtype)                 # (F, D), tiny
    bias2 = bias.astype(dtype).reshape(1, D)
    pe = pe_table if pe_table.dtype == dtype else pe_table.astype(dtype)

    ebytes = jnp.dtype(dtype).itemsize
    cap = _vmem_capacity_bytes()
    if seq_tile is None:
        # 2 pipeline buffers each for: pos tile, out tile, pe tile
        per_row = 2 * (B * F + B * D + D) * ebytes
        seq_tile = _choose_seq_tile(S, per_row, cap // 2)
    grid_rows = pl.cdiv(S, seq_tile)
    assert pe.shape[0] >= grid_rows * seq_tile, "pe_table too short for padded grid"

    out = pl.pallas_call(
        functools.partial(_pos2emb_pe_kernel, batch=B, d_feature=F),
        out_shape=jax.ShapeDtypeStruct((B, S, D), dtype),
        grid_spec=pltpu.PrefetchScalarGridSpec(
            num_scalar_prefetch=0,
            grid=(grid_rows,),
            in_specs=[
                pl.BlockSpec((B, seq_tile, F), lambda i: (0, i, 0)),
                pl.BlockSpec((F, D), lambda i: (0, 0)),
                pl.BlockSpec((1, D), lambda i: (0, 0)),
                pl.BlockSpec((seq_tile, D), lambda i: (i, 0)),
            ],
            out_specs=pl.BlockSpec((B, seq_tile, D), lambda i: (0, i, 0)),
        ),
        compiler_params=pltpu.CompilerParams(
            dimension_semantics=("parallel",),
            vmem_limit_bytes=int(cap * 3 // 4),
        ),
    )(position_seq, wt, bias2, pe)
    return out


if __name__ == "__main__":
    # Shapes consistent with the module: d_model=256, d_feature=3; small seq/batch.
    seq_len, batch, d_model, d_feature, max_len = 16, 2, 256, 3, 64

    key = jax.random.PRNGKey(0)
    k_x, k_pos, k_w, k_b = jax.random.split(key, 4)

    pe_table = _make_pe_table(max_len, d_model)

    # --- standalone PositionEncoding.forward (x: [S, B, D]) -----------------
    x = jax.random.normal(k_x, (seq_len, batch, d_model), dtype=jnp.float32)
    y = position_encoding(x, pe_table)                    # auto VMEM-sized tile
    y_small = position_encoding(x, pe_table, seq_tile=8)  # exercise a multi-step grid
    y, y_small = jax.block_until_ready((y, y_small))

    ref = x + pe_table[:seq_len][:, None, :]
    assert y.shape == (seq_len, batch, d_model)
    assert jnp.allclose(y, ref, atol=1e-6), "PE mismatch vs reference"
    assert jnp.allclose(y_small, ref, atol=1e-6), "PE (tiled) mismatch vs reference"

    # --- fused position2embedding + PositionEncoding (Decoder front-end) ----
    position_seq = jax.random.normal(k_pos, (batch, seq_len, d_feature), dtype=jnp.float32)
    weight = jax.random.normal(k_w, (d_model, d_feature), dtype=jnp.float32) * 0.1
    bias = jax.random.normal(k_b, (d_model,), dtype=jnp.float32) * 0.1

    z = pos2emb_position_encoding(position_seq, weight, bias, pe_table)
    z = jax.block_until_ready(z)

    ref_z = (jnp.einsum("bsf,df->bsd", position_seq, weight)
             + bias[None, None, :]
             + pe_table[:seq_len][None, :, :])
    assert z.shape == (batch, seq_len, d_model)
    assert jnp.allclose(z, ref_z, atol=1e-4, rtol=1e-5), "fused pos2emb+PE mismatch"

    print("KERNEL_OK")
</pallas_src>

<mosaic_0001>
module attributes {stable_mosaic.version = 11 : i64} {
  func.func @_pe_add_kernel(%arg0: i32, %arg1: memref<16x512xf32, #tpu.memory_space<vmem>>, %arg2: memref<16x256xf32, #tpu.memory_space<vmem>>, %arg3: memref<16x512xf32, #tpu.memory_space<vmem>>) attributes {dimension_semantics = [#tpu.dimension_semantics<parallel>], iteration_bounds = array<i64: 1>, scalar_prefetch = 0 : i64, scratch_operands = 0 : i64, tpu.core_type = #tpu.core_type<tc>, window_params = [{transform_indices = @transform_0, window_bounds = array<i64: 16, 512>}, {transform_indices = @transform_1, window_bounds = array<i64: 16, 256>}, {transform_indices = @transform_2, window_bounds = array<i64: 16, 512>}]} {
    %c0 = arith.constant 0 : index
    %c0_0 = arith.constant 0 : index
    %0 = vector.load %arg2[%c0, %c0_0] : memref<16x256xf32, #tpu.memory_space<vmem>>, vector<16x256xf32>
    %c0_1 = arith.constant 0 : index
    %c0_2 = arith.constant 0 : index
    %1 = vector.load %arg1[%c0_1, %c0_2] : memref<16x512xf32, #tpu.memory_space<vmem>>, vector<16x256xf32>
    %2 = arith.addf %1, %0 : vector<16x256xf32>
    %c0_3 = arith.constant 0 : index
    %c0_4 = arith.constant 0 : index
    %3 = vector.load %arg3[%c0_3, %c0_4] : memref<16x512xf32, #tpu.memory_space<vmem>>, vector<16x256xf32>
    tpu.vector_store %arg3[%c0_3, %c0_4], %2 {strides = array<i32>} : memref<16x512xf32, #tpu.memory_space<vmem>>, vector<16x256xf32>,
    %c0_5 = arith.constant 0 : index
    %c256 = arith.constant 256 : index
    %4 = vector.load %arg1[%c0_5, %c256] : memref<16x512xf32, #tpu.memory_space<vmem>>, vector<16x256xf32>
    %5 = arith.addf %4, %0 : vector<16x256xf32>
    %c0_6 = arith.constant 0 : index
    %c256_7 = arith.constant 256 : index
    %6 = vector.load %arg3[%c0_6, %c256_7] : memref<16x512xf32, #tpu.memory_space<vmem>>, vector<16x256xf32>
    tpu.vector_store %arg3[%c0_6, %c256_7], %5 {strides = array<i32>} : memref<16x512xf32, #tpu.memory_space<vmem>>, vector<16x256xf32>,
    return
  }
  func.func @transform_0(%arg0: i32) -> (i32, i32) {
    %c0_i32 = arith.constant 0 : i32
    %c0_i32_0 = arith.constant 0 : i32
    return %arg0, %c0_i32 : i32, i32
  }
  func.func @transform_1(%arg0: i32) -> (i32, i32) {
    %c0_i32 = arith.constant 0 : i32
    %c0_i32_0 = arith.constant 0 : i32
    return %arg0, %c0_i32 : i32, i32
  }
  func.func @transform_2(%arg0: i32) -> (i32, i32) {
    %c0_i32 = arith.constant 0 : i32
    %c0_i32_0 = arith.constant 0 : i32
    return %arg0, %c0_i32 : i32, i32
  }
}

</mosaic_0001>

<bundles_post_ra>
// kernel: tpu_custom_call.1
= control target key start
LH: loop header
LB: loop body
LE: loop exit
PB: predicated region body
PF: predicated region fallthrough
CT: control target
= control target key end

     0   :  { %7 = vsyncpa [#allocation3], 0  ;;  %s232_s0 = inlined_call_operand.hbm [shape: f32[16,512], index: 0, kind: input, shape index: {}]   ;;  %s233_s1 = inlined_call_operand.hbm [shape: f32[64,256], index: 1, kind: input, shape index: {}]   ;;  %s234_s2 = inlined_call_operand.hbm [shape: f32[16,512], index: 2, kind: output, shape index: {}]  }
   0x1   :  { %8 = vsyncpa [#allocation6], 0 }
   0x2   :  { %9 = vsyncpa [#allocation4], 0  ;;  %s165_s9 = smov [#allocation2]   ;;  %s93_s13 = scalar_lea.hbm %s232_s0, 1024 }
   0x3   :  { %s15_s10 = sshll.u32 %s165_s9, 4  ;;  %p94_p0 = scmp.ne.s32.totalorder %s232_s0, %s93_s13  ;;  %s16_s10 = int_to_ptr.vmem [resolvable:$true] %s15_s10 }
   0x4   :  { %p97_p1 = scmp.lt.u32.totalorder %s93_s13, %s232_s0 }
   0x6   :  { %p99_p2 = pnand %p97_p1, %p94_p0 }
   0x8   :  { %102 = shalt.err (!%p99_p2)
}
   0x9   :  { %s103_s18 = scalar_lea.vmem %s16_s10, 1024  ;;  %p108_p4 = scmp.lt.s32.totalorder %s16_s10, %s16_s10 }
   0xa   :  { %p104_p3 = scmp.ne.s32.totalorder %s16_s10, %s103_s18  ;;  %p109_p5 = scmp.lt.s32.totalorder %s103_s18, %s103_s18 }
   0xc   :  { %p110_p6 = por %p109_p5, %p108_p4 }
   0xe   :  { %p111_p7 = pnand %p110_p6, %p104_p3 }
  0x10   :  { %114 = shalt.err (!%p111_p7)
}
  0x11   :  { %s166_s19 = smov 512   ;;  %s167_s20 = smov 32  }
  0x12   :  { %21 = dma.hbm_to_vmem [thread:$0]  %s232_s0, 1024, %s16_s10, [#allocation3], %s166_s19, %s166_s19, %s167_s20  }
  0x13   :  { %s168_s23 = smov [#allocation5]   ;;  %s115_s27 = scalar_lea.hbm %s233_s1, 512 }
  0x14   :  { %s27_s24 = sshll.u32 %s168_s23, 4  ;;  %p116_p8 = scmp.ne.s32.totalorder %s233_s1, %s115_s27  ;;  %s28_s24 = int_to_ptr.vmem [resolvable:$true] %s27_s24 }
  0x15   :  { %s117_s4 = scalar_lea.hbm %s233_s1, 2048  ;;  %p119_p10 = scmp.lt.u32.totalorder %s115_s27, %s233_s1 }
  0x16   :  { %p118_p9 = scmp.lt.u32.totalorder %s117_s4, %s115_s27 }
  0x18   :  { %p120_p11 = por %p119_p10, %p118_p9 }
  0x1a   :  { %p121_p12 = pnand %p120_p11, %p116_p8 }
  0x1c   :  { %124 = shalt.err (!%p121_p12)
}
  0x1d   :  { %s125_s0 = scalar_lea.vmem %s28_s24, 512  ;;  %p130_p0 = scmp.lt.s32.totalorder %s28_s24, %s28_s24 }
  0x1e   :  { %p126_p13 = scmp.ne.s32.totalorder %s28_s24, %s125_s0  ;;  %p131_p1 = scmp.lt.s32.totalorder %s125_s0, %s125_s0 }
  0x20   :  { %p132_p2 = por %p131_p1, %p130_p0 }
  0x22   :  { %p133_p3 = pnand %p132_p2, %p126_p13 }
  0x24   :  { %136 = shalt.err (!%p133_p3)
}
  0x25   :  { %s169_s7 = smov 256   ;;  %s170_s8 = smov 16  }
  0x26   :  { %33 = dma.hbm_to_vmem [thread:$0]  %s233_s1, 512, %s28_s24, [#allocation6], %s169_s7, %s169_s7, %s170_s8  }
  0x27   :  { %159 = dma.done.wait [#allocation3], 1024  }
  0x28   :  { %160 = vsyncadd [#allocation3], 4294966272 }
  0x29   :  { %161 = dma.done.wait [#allocation6], 512  }
  0x2a   :  { %162 = vsyncadd [#allocation6], 4294966784  ;;  %v40_v0 = vld [vmem:[#allocation5] sm:$0xff]  ;;  %v41_v2 = vld [vmem:[#allocation5 + $0x8] sm:$0xff]  ;;  %s171_s11 = smov [#allocation7]  }
  0x2b   :  { %v44_v1 = vld [vmem:[#allocation2] sm:$0xff]  ;;  %v45_v4 = vld [vmem:[#allocation2 + $0x8] sm:$0xff]  ;;  %v42_v5 = vld [vmem:[#allocation5 + $0x10] sm:$0xff]  ;;  %s73_s12 = sshll.u32 %s171_s11, 4  ;;  %s74_s12 = int_to_ptr.vmem [resolvable:$true] %s73_s12 }
  0x2c   :  { %v48_v3 = vadd.f32 %v44_v1, %v40_v0  ;;  %v46_v6 = vld [vmem:[#allocation2 + $0x20] sm:$0xff]  ;;  %v49_v7 = vadd.f32 %v45_v4, %v41_v2  ;;  %v43_v9 = vld [vmem:[#allocation5 + $0x18] sm:$0xff]  ;;  %v47_v10 = vld [vmem:[#allocation2 + $0x28] sm:$0xff]  ;;  %s137_s1 = scalar_lea.vmem %s74_s12, 1024  ;;  %p142_p5 = scmp.lt.s32.totalorder %s74_s12, %s74_s12 }
  0x2d   :  { %v50_v8 = vadd.f32 %v46_v6, %v42_v5  ;;  %v56_v11 = vld [vmem:[#allocation2 + $0x10] sm:$0xff]  ;;  %v51_v12 = vadd.f32 %v47_v10, %v43_v9  ;;  %v57_v14 = vld [vmem:[#allocation2 + $0x18] sm:$0xff]  ;;  %p138_p4 = scmp.ne.s32.totalorder %s74_s12, %s137_s1  ;;  %p143_p6 = scmp.lt.s32.totalorder %s137_s1, %s137_s1 }
  0x2e   :  { %52 = vst [vmem:[#allocation7] sm:$0xff] %v48_v3  ;;  %v60_v13 = vadd.f32 %v56_v11, %v40_v0  ;;  %v58_v15 = vld [vmem:[#allocation2 + $0x30] sm:$0xff]  ;;  %v59_v16 = vld [vmem:[#allocation2 + $0x38] sm:$0xff]  ;;  %53 = vst [vmem:[#allocation7 + $0x8] sm:$0xff] %v49_v7  ;;  %v61_v17 = vadd.f32 %v57_v14, %v41_v2 }
  0x2f   :  { %54 = vst [vmem:[#allocation7 + $0x20] sm:$0xff] %v50_v8  ;;  %v62_v18 = vadd.f32 %v58_v15, %v42_v5  ;;  %v63_v19 = vadd.f32 %v59_v16, %v43_v9  ;;  %55 = vst [vmem:[#allocation7 + $0x28] sm:$0xff] %v51_v12  ;;  %p144_p7 = por %p143_p6, %p142_p5 }
  0x30   :  { %64 = vst [vmem:[#allocation7 + $0x10] sm:$0xff] %v60_v13  ;;  %65 = vst [vmem:[#allocation7 + $0x18] sm:$0xff] %v61_v17 }
  0x31   :  { %66 = vst [vmem:[#allocation7 + $0x30] sm:$0xff] %v62_v18  ;;  %67 = vst [vmem:[#allocation7 + $0x38] sm:$0xff] %v63_v19  ;;  %p145_p8 = pnand %p144_p7, %p138_p4 }
  0x33   :  { %148 = shalt.err (!%p145_p8)
}
  0x34   :  { %s149_s15 = scalar_lea.hbm %s234_s2, 1024 }
  0x35   :  { %p150_p9 = scmp.ne.s32.totalorder %s234_s2, %s149_s15  ;;  %p153_p10 = scmp.lt.u32.totalorder %s149_s15, %s234_s2 }
  0x37   :  { %p155_p11 = pnand %p153_p10, %p150_p9 }
  0x39   :  { %158 = shalt.err (!%p155_p11)
}
  0x3a   :  { %79 = dma.vmem_to_hbm [thread:$0]  %s74_s12, 1024, %s234_s2, [#allocation4], %s166_s19, %s166_s19, %s167_s20  }
  0x3b   :  { %163 = dma.done.wait [#allocation4], 1024  }
  0x3c   :  { %164 = vsyncadd [#allocation4], 4294966272 }
  0x3d   :  { %83 = vsyncpa [#allocation3], 1 }
  0x3e   :  { %84 = vsyncpa [#allocation6], 1 }
  0x3f   :  { %85 = vsyncpa [#allocation4], 1 }

</bundles_post_ra>
